<compile_context>
chip_gen: v5e
topology: v5e:2x2
jax: 0.10.0
libtpu: 0.0.40
codegen_flags: <defaults>
</compile_context>

<pallas_src>
import functools

import jax
import jax.numpy as jnp
from jax.experimental import pallas as pl
from jax.experimental.pallas import tpu as pltpu


def _round_up(x, m):
    return ((x + m - 1) // m) * m


# ---------------------------------------------------------------------------
# Kernel helpers (traced inside the Pallas body) — elementwise math stays f32
# ---------------------------------------------------------------------------
def _gelu_tanh(x):
    # PyTorch nn.GELU(approximate='tanh')
    c = jnp.sqrt(2.0 / jnp.pi).astype(x.dtype)
    return 0.5 * x * (1.0 + jnp.tanh(c * (x + 0.044715 * x * x * x)))


def _layernorm_noaffine(x, eps=1e-5):
    # PyTorch nn.LayerNorm(..., elementwise_affine=False): biased variance over last dim
    mean = jnp.mean(x, axis=-1, keepdims=True)
    xc = x - mean
    var = jnp.mean(xc * xc, axis=-1, keepdims=True)
    return xc * jax.lax.rsqrt(var + eps)


def _dot_bf16(a, b):
    # bf16 MXU inputs, f32 accumulation
    return jnp.dot(a.astype(jnp.bfloat16), b.astype(jnp.bfloat16),
                   preferred_element_type=jnp.float32)


def _gram_bf16(x):
    # x @ x.T (contract last dims of both operands; transpose is free at these sizes)
    xb = x.astype(jnp.bfloat16)
    return jax.lax.dot_general(xb, xb, (((1,), (1,)), ((), ())),
                               preferred_element_type=jnp.float32)


def _mlp(x, w1, b1, w2, b2):
    h = _dot_bf16(x, w1) + b1
    h = _gelu_tanh(h)
    h = _layernorm_noaffine(h)
    return _dot_bf16(h, w2) + b2


def _embed_block(x, rows, cols):
    # Zero-pad x to (rows, cols), placed in the top-left corner (for lane-dense stores).
    r, c = x.shape
    if c < cols:
        x = jnp.concatenate([x, jnp.zeros((r, cols - c), x.dtype)], axis=1)
    if r < rows:
        x = jnp.concatenate([x, jnp.zeros((rows - r, cols), x.dtype)], axis=0)
    return x


# ---------------------------------------------------------------------------
# Fused SepAssociator forward kernel (single grid point, everything in VMEM)
# ---------------------------------------------------------------------------
def sep_associator_kernel(
    obj_ref,      # (B*K, Ho)   padded object embeddings, flattened
    place_ref,    # (B, Hp)     place embeddings
    params_ref,   # (R_params, D) packed MLP parameters (8-row aligned blocks)
    out_ref,      # (R_out, W)  packed lane-dense output slab
    *, Ho, Hp, D, param_offsets, out_rows, W,
):
    (o_w1, o_b1, o_w2, o_b2, p_w1, p_b1, p_w2, p_b2) = param_offsets
    # static, sublane-aligned row slices of the single packed parameter buffer
    ow1 = params_ref[o_w1:o_w1 + Ho, :]
    ob1 = params_ref[o_b1:o_b1 + 1, :]
    ow2 = params_ref[o_w2:o_w2 + D, :]
    ob2 = params_ref[o_b2:o_b2 + 1, :]
    pw1 = params_ref[p_w1:p_w1 + Hp, :]
    pb1 = params_ref[p_b1:p_b1 + 1, :]
    pw2 = params_ref[p_w2:p_w2 + D, :]
    pb2 = params_ref[p_b2:p_b2 + 1, :]

    # ---- object branch -----------------------------------------------------
    obj_feat = _mlp(obj_ref[...], ow1, ob1, ow2, ob2)
    # predict_object: measure_cos_obj == False -> raw gram matrix.
    # NOTE: padded (all-zero) object rows still produce nonzero logits (bias + LayerNorm of a
    # constant), exactly like the PyTorch module; downstream losses must mask them.
    obj_logits = _gram_bf16(obj_feat)

    # ---- place branch ------------------------------------------------------
    place_feat = _mlp(place_ref[...], pw1, pb1, pw2, pb2)
    # predict_place: measure_cos_pp == True -> L2-normalize rows (rsqrt, EUP), then gram
    inv_norm = jax.lax.rsqrt(
        jnp.sum(place_feat * place_feat, axis=-1, keepdims=True) + 1e-12)
    normed_p = place_feat * inv_norm
    place_logits = _gram_bf16(normed_p)

    # ---- lane-dense packed output stores (full 128-lane width, 8-aligned rows) ----
    r_of, r_pf, r_ol, r_pl = out_rows
    row = 0
    out_ref[row:row + r_of, :] = _embed_block(obj_feat, r_of, W).astype(out_ref.dtype)
    row += r_of
    out_ref[row:row + r_pf, :] = _embed_block(place_feat, r_pf, W).astype(out_ref.dtype)
    row += r_pf
    out_ref[row:row + r_ol, :] = _embed_block(obj_logits, r_ol, W).astype(out_ref.dtype)
    row += r_ol
    out_ref[row:row + r_pl, :] = _embed_block(place_logits, r_pl, W).astype(out_ref.dtype)


# ---------------------------------------------------------------------------
# Wrapper: pack params, call the kernel once, split the output slab
# ---------------------------------------------------------------------------
_PARAM_ORDER = ("ow1", "ob1", "ow2", "ob2", "pw1", "pb1", "pw2", "pb2")


def _pack_params(params):
    """Row-stack all 8 parameter tensors (shared last dim D), each padded to 8-row blocks."""
    blocks, offsets, off = [], [], 0
    for name in _PARAM_ORDER:
        p = params[name]
        r = p.shape[0]
        rp = _round_up(r, 8)
        blocks.append(jnp.pad(p, ((0, rp - r), (0, 0))))
        offsets.append(off)
        off += rp
    return jnp.concatenate(blocks, axis=0), tuple(offsets)


def sep_associator_forward(padded_object_emb, place_emb, params):
    """padded_object_emb: (B, K, Ho) float32;  place_emb: (B, Hp) float32."""
    B, K, Ho = padded_object_emb.shape
    Hp = place_emb.shape[1]
    D = params["ow2"].shape[1]
    BK = B * K

    obj_flat = padded_object_emb.reshape(BK, Ho)     # glue reshape (plain JAX)
    packed_params, offsets = _pack_params(params)    # single contiguous param buffer

    # packed output slab layout (lane-dense: width is a multiple of 128)
    W = _round_up(max(D, BK, B), 128)
    r_of = _round_up(BK, 8)   # object_feat rows
    r_pf = _round_up(B, 8)    # place_feat rows
    r_ol = _round_up(BK, 8)   # object_logits rows
    r_pl = _round_up(B, 8)    # place_logits rows
    R = r_of + r_pf + r_ol + r_pl

    kernel = functools.partial(
        sep_associator_kernel,
        Ho=Ho, Hp=Hp, D=D,
        param_offsets=offsets,
        out_rows=(r_of, r_pf, r_ol, r_pl),
        W=W,
    )
    vmem = pl.BlockSpec(memory_space=pltpu.MemorySpace.VMEM)
    slab = pl.pallas_call(
        kernel,
        out_shape=jax.ShapeDtypeStruct((R, W), jnp.float32),
        in_specs=[vmem, vmem, vmem],
        out_specs=vmem,
    )(obj_flat, place_emb, packed_params)

    # split the slab (cheap XLA slices outside the kernel)
    o0 = 0
    obj_feat_flat = slab[o0:o0 + BK, :D];     o0 += r_of
    place_feat    = slab[o0:o0 + B, :D];      o0 += r_pf
    obj_logits    = slab[o0:o0 + BK, :BK];    o0 += r_ol
    place_logits  = slab[o0:o0 + B, :B]

    return {
        "embeddings": obj_feat_flat.reshape(B, K, D),
        "place_embeddings": place_feat,
        "place_predictions": place_logits,
        "object_predictions": obj_logits,
    }


# ---------------------------------------------------------------------------
# Deterministic parameter init (xavier_uniform weights, zero biases)
# ---------------------------------------------------------------------------
def _xavier_uniform(key, fan_in, fan_out):
    limit = jnp.sqrt(6.0 / (fan_in + fan_out))
    return jax.random.uniform(key, (fan_in, fan_out), jnp.float32, -limit, limit)


def init_params(key, object_dim, place_dim, output_dim):
    k = jax.random.split(key, 4)
    return {
        "ow1": _xavier_uniform(k[0], object_dim, output_dim),
        "ob1": jnp.zeros((1, output_dim), jnp.float32),
        "ow2": _xavier_uniform(k[1], output_dim, output_dim),
        "ob2": jnp.zeros((1, output_dim), jnp.float32),
        "pw1": _xavier_uniform(k[2], place_dim, output_dim),
        "pb1": jnp.zeros((1, output_dim), jnp.float32),
        "pw2": _xavier_uniform(k[3], output_dim, output_dim),
        "pb2": jnp.zeros((1, output_dim), jnp.float32),
    }


# ---------------------------------------------------------------------------
# Pure-JAX (full f32) reference for a correctness check
# ---------------------------------------------------------------------------
def _ref_forward(padded_obj, place_emb, p):
    def mlp(x, w1, b1, w2, b2):
        h = x @ w1 + b1
        h = jax.nn.gelu(h, approximate=True)
        mean = h.mean(-1, keepdims=True)
        var = ((h - mean) ** 2).mean(-1, keepdims=True)
        h = (h - mean) / jnp.sqrt(var + 1e-5)
        return h @ w2 + b2

    B, K, Ho = padded_obj.shape
    of = mlp(padded_obj.reshape(B * K, Ho), p["ow1"], p["ob1"], p["ow2"], p["ob2"])
    pf = mlp(place_emb, p["pw1"], p["pb1"], p["pw2"], p["pb2"])
    obj_logits = of @ of.T
    normed = pf / jnp.linalg.norm(pf, axis=-1, keepdims=True)
    place_logits = normed @ normed.T
    return of.reshape(B, K, -1), pf, obj_logits, place_logits


# ---------------------------------------------------------------------------
if __name__ == "__main__":
    B, K, object_dim, place_dim, output_dim = 2, 8, 32, 32, 32

    key = jax.random.PRNGKey(0)
    k_obj, k_place, k_par = jax.random.split(key, 3)

    # Emulate pad_sequence: list of B variable-length (K_i, Ho) tensors, zero-padded to K.
    lengths = [5, 8]
    raw = jax.random.normal(k_obj, (B, K, object_dim), jnp.float32)
    row_ids = jnp.arange(K)[None, :, None]
    valid = row_ids < jnp.asarray(lengths)[:, None, None]
    padded_object_emb = jnp.where(valid, raw, 0.0)

    place_emb = jax.random.normal(k_place, (B, place_dim), jnp.float32)
    params = init_params(k_par, object_dim, place_dim, output_dim)

    results = sep_associator_forward(padded_object_emb, place_emb, params)
    jax.block_until_ready(results)

    # sanity check against pure-f32 JAX reference (kernel uses bf16 MXU inputs w/ f32 accum,
    # so tolerances are set for bf16-level rounding)
    ref_of, ref_pf, ref_ol, ref_pl = _ref_forward(padded_object_emb, place_emb, params)
    assert jnp.allclose(results["embeddings"], ref_of, atol=3e-2, rtol=3e-2)
    assert jnp.allclose(results["place_embeddings"], ref_pf, atol=3e-2, rtol=3e-2)
    assert jnp.allclose(results["object_predictions"], ref_ol, atol=1e-1, rtol=5e-2)
    assert jnp.allclose(results["place_predictions"], ref_pl, atol=3e-2, rtol=3e-2)
    assert bool(jnp.all(jnp.isfinite(results["place_predictions"])))

    print("KERNEL_OK")
</pallas_src>

<mosaic_0001>
module attributes {stable_mosaic.version = 11 : i64} {
  func.func @sep_associator_kernel(%arg0: memref<16x32xf32, #tpu.memory_space<vmem>>, %arg1: memref<2x32xf32, #tpu.memory_space<vmem>>, %arg2: memref<160x32xf32, #tpu.memory_space<vmem>>, %arg3: memref<48x128xf32, #tpu.memory_space<vmem>>) attributes {dimension_semantics = [], scalar_prefetch = 0 : i64, scratch_operands = 0 : i64, tpu.core_type = #tpu.core_type<tc>} {
    %c0 = arith.constant 0 : index
    %c0_0 = arith.constant 0 : index
    %0 = vector.load %arg2[%c0, %c0_0] : memref<160x32xf32, #tpu.memory_space<vmem>>, vector<32x32xf32>
    %c32 = arith.constant 32 : index
    %c0_1 = arith.constant 0 : index
    %1 = vector.load %arg2[%c32, %c0_1] : memref<160x32xf32, #tpu.memory_space<vmem>>, vector<1x32xf32>
    %c40 = arith.constant 40 : index
    %c0_2 = arith.constant 0 : index
    %2 = vector.load %arg2[%c40, %c0_2] : memref<160x32xf32, #tpu.memory_space<vmem>>, vector<32x32xf32>
    %c72 = arith.constant 72 : index
    %c0_3 = arith.constant 0 : index
    %3 = vector.load %arg2[%c72, %c0_3] : memref<160x32xf32, #tpu.memory_space<vmem>>, vector<1x32xf32>
    %c80 = arith.constant 80 : index
    %c0_4 = arith.constant 0 : index
    %4 = vector.load %arg2[%c80, %c0_4] : memref<160x32xf32, #tpu.memory_space<vmem>>, vector<32x32xf32>
    %c112 = arith.constant 112 : index
    %c0_5 = arith.constant 0 : index
    %5 = vector.load %arg2[%c112, %c0_5] : memref<160x32xf32, #tpu.memory_space<vmem>>, vector<1x32xf32>
    %c120 = arith.constant 120 : index
    %c0_6 = arith.constant 0 : index
    %6 = vector.load %arg2[%c120, %c0_6] : memref<160x32xf32, #tpu.memory_space<vmem>>, vector<32x32xf32>
    %c152 = arith.constant 152 : index
    %c0_7 = arith.constant 0 : index
    %7 = vector.load %arg2[%c152, %c0_7] : memref<160x32xf32, #tpu.memory_space<vmem>>, vector<1x32xf32>
    %c0_8 = arith.constant 0 : index
    %c0_9 = arith.constant 0 : index
    %8 = vector.load %arg0[%c0_8, %c0_9] : memref<16x32xf32, #tpu.memory_space<vmem>>, vector<16x32xf32>
    %9 = arith.truncf %8 : vector<16x32xf32> to vector<16x32xbf16>
    %10 = arith.truncf %0 : vector<32x32xf32> to vector<32x32xbf16>
    %cst = arith.constant dense<0.000000e+00> : vector<16x32xf32>
    %11 = tpu.matmul %9, %10, %cst {dimension_numbers = #tpu.dot_dimension_numbers<[1], [0], [0], [1], [0, 0, 1, 1], [], []>} : vector<16x32xbf16>, vector<32x32xbf16>, vector<16x32xf32> -> vector<16x32xf32>
    %12 = vector.broadcast %1 : vector<1x32xf32> to vector<16x32xf32>
    %13 = arith.addf %11, %12 : vector<16x32xf32>
    %cst_10 = arith.constant 0.636619746 : f32
    %14 = math.sqrt %cst_10 : f32
    %cst_11 = arith.constant 5.000000e-01 : f32
    %15 = vector.broadcast %cst_11 : f32 to vector<16x32xf32>
    %16 = arith.mulf %15, %13 : vector<16x32xf32>
    %cst_12 = arith.constant 4.471500e-02 : f32
    %17 = vector.broadcast %cst_12 : f32 to vector<16x32xf32>
    %18 = arith.mulf %17, %13 : vector<16x32xf32>
    %19 = arith.mulf %18, %13 : vector<16x32xf32>
    %20 = arith.mulf %19, %13 : vector<16x32xf32>
    %21 = arith.addf %13, %20 : vector<16x32xf32>
    %22 = vector.broadcast %14 : f32 to vector<16x32xf32>
    %23 = arith.mulf %22, %21 : vector<16x32xf32>
    %24 = math.tanh %23 : vector<16x32xf32>
    %cst_13 = arith.constant 1.000000e+00 : f32
    %25 = vector.broadcast %cst_13 : f32 to vector<16x32xf32>
    %26 = arith.addf %25, %24 : vector<16x32xf32>
    %27 = arith.mulf %16, %26 : vector<16x32xf32>
    %cst_14 = arith.constant dense<0.000000e+00> : vector<16xf32>
    %28 = vector.multi_reduction <add>, %27, %cst_14 [1] : vector<16x32xf32> to vector<16xf32>
    %29 = vector.shape_cast %28 : vector<16xf32> to vector<16x1xf32>
    %cst_15 = arith.constant 3.200000e+01 : f32
    %30 = vector.broadcast %cst_15 : f32 to vector<16x1xf32>
    %31 = arith.divf %29, %30 : vector<16x1xf32>
    %32 = vector.broadcast %31 : vector<16x1xf32> to vector<16x32xf32>
    %33 = arith.subf %27, %32 : vector<16x32xf32>
    %34 = arith.mulf %33, %33 : vector<16x32xf32>
    %cst_16 = arith.constant dense<0.000000e+00> : vector<16xf32>
    %35 = vector.multi_reduction <add>, %34, %cst_16 [1] : vector<16x32xf32> to vector<16xf32>
    %36 = vector.shape_cast %35 : vector<16xf32> to vector<16x1xf32>
    %cst_17 = arith.constant 3.200000e+01 : f32
    %37 = vector.broadcast %cst_17 : f32 to vector<16x1xf32>
    %38 = arith.divf %36, %37 : vector<16x1xf32>
    %cst_18 = arith.constant 9.99999974E-6 : f32
    %39 = vector.broadcast %cst_18 : f32 to vector<16x1xf32>
    %40 = arith.addf %38, %39 : vector<16x1xf32>
    %41 = math.rsqrt %40 : vector<16x1xf32>
    %42 = vector.broadcast %41 : vector<16x1xf32> to vector<16x32xf32>
    %43 = arith.mulf %33, %42 : vector<16x32xf32>
    %44 = arith.truncf %43 : vector<16x32xf32> to vector<16x32xbf16>
    %45 = arith.truncf %2 : vector<32x32xf32> to vector<32x32xbf16>
    %cst_19 = arith.constant dense<0.000000e+00> : vector<16x32xf32>
    %46 = tpu.matmul %44, %45, %cst_19 {dimension_numbers = #tpu.dot_dimension_numbers<[1], [0], [0], [1], [0, 0, 1, 1], [], []>} : vector<16x32xbf16>, vector<32x32xbf16>, vector<16x32xf32> -> vector<16x32xf32>
    %47 = vector.broadcast %3 : vector<1x32xf32> to vector<16x32xf32>
    %48 = arith.addf %46, %47 : vector<16x32xf32>
    %49 = arith.truncf %48 : vector<16x32xf32> to vector<16x32xbf16>
    %cst_20 = arith.constant dense<0.000000e+00> : vector<16x16xf32>
    %50 = tpu.matmul %49, %49, %cst_20 {dimension_numbers = #tpu.dot_dimension_numbers<[1], [1], [0], [0], [0, 0, 1, 0], [], []>} : vector<16x32xbf16>, vector<16x32xbf16>, vector<16x16xf32> -> vector<16x16xf32>
    %c0_21 = arith.constant 0 : index
    %c0_22 = arith.constant 0 : index
    %51 = vector.load %arg1[%c0_21, %c0_22] : memref<2x32xf32, #tpu.memory_space<vmem>>, vector<2x32xf32>
    %52 = arith.truncf %51 : vector<2x32xf32> to vector<2x32xbf16>
    %53 = arith.truncf %4 : vector<32x32xf32> to vector<32x32xbf16>
    %cst_23 = arith.constant dense<0.000000e+00> : vector<2x32xf32>
    %54 = tpu.matmul %52, %53, %cst_23 {dimension_numbers = #tpu.dot_dimension_numbers<[1], [0], [0], [1], [0, 0, 1, 1], [], []>} : vector<2x32xbf16>, vector<32x32xbf16>, vector<2x32xf32> -> vector<2x32xf32>
    %55 = vector.broadcast %5 : vector<1x32xf32> to vector<2x32xf32>
    %56 = arith.addf %54, %55 : vector<2x32xf32>
    %cst_24 = arith.constant 0.636619746 : f32
    %57 = math.sqrt %cst_24 : f32
    %cst_25 = arith.constant 5.000000e-01 : f32
    %58 = vector.broadcast %cst_25 : f32 to vector<2x32xf32>
    %59 = arith.mulf %58, %56 : vector<2x32xf32>
    %cst_26 = arith.constant 4.471500e-02 : f32
    %60 = vector.broadcast %cst_26 : f32 to vector<2x32xf32>
    %61 = arith.mulf %60, %56 : vector<2x32xf32>
    %62 = arith.mulf %61, %56 : vector<2x32xf32>
    %63 = arith.mulf %62, %56 : vector<2x32xf32>
    %64 = arith.addf %56, %63 : vector<2x32xf32>
    %65 = vector.broadcast %57 : f32 to vector<2x32xf32>
    %66 = arith.mulf %65, %64 : vector<2x32xf32>
    %67 = math.tanh %66 : vector<2x32xf32>
    %cst_27 = arith.constant 1.000000e+00 : f32
    %68 = vector.broadcast %cst_27 : f32 to vector<2x32xf32>
    %69 = arith.addf %68, %67 : vector<2x32xf32>
    %70 = arith.mulf %59, %69 : vector<2x32xf32>
    %cst_28 = arith.constant dense<0.000000e+00> : vector<2xf32>
    %71 = vector.multi_reduction <add>, %70, %cst_28 [1] : vector<2x32xf32> to vector<2xf32>
    %72 = vector.shape_cast %71 : vector<2xf32> to vector<2x1xf32>
    %cst_29 = arith.constant 3.200000e+01 : f32
    %73 = vector.broadcast %cst_29 : f32 to vector<2x1xf32>
    %74 = arith.divf %72, %73 : vector<2x1xf32>
    %75 = vector.broadcast %74 : vector<2x1xf32> to vector<2x32xf32>
    %76 = arith.subf %70, %75 : vector<2x32xf32>
    %77 = arith.mulf %76, %76 : vector<2x32xf32>
    %cst_30 = arith.constant dense<0.000000e+00> : vector<2xf32>
    %78 = vector.multi_reduction <add>, %77, %cst_30 [1] : vector<2x32xf32> to vector<2xf32>
    %79 = vector.shape_cast %78 : vector<2xf32> to vector<2x1xf32>
    %cst_31 = arith.constant 3.200000e+01 : f32
    %80 = vector.broadcast %cst_31 : f32 to vector<2x1xf32>
    %81 = arith.divf %79, %80 : vector<2x1xf32>
    %cst_32 = arith.constant 9.99999974E-6 : f32
    %82 = vector.broadcast %cst_32 : f32 to vector<2x1xf32>
    %83 = arith.addf %81, %82 : vector<2x1xf32>
    %84 = math.rsqrt %83 : vector<2x1xf32>
    %85 = vector.broadcast %84 : vector<2x1xf32> to vector<2x32xf32>
    %86 = arith.mulf %76, %85 : vector<2x32xf32>
    %87 = arith.truncf %86 : vector<2x32xf32> to vector<2x32xbf16>
    %88 = arith.truncf %6 : vector<32x32xf32> to vector<32x32xbf16>
    %cst_33 = arith.constant dense<0.000000e+00> : vector<2x32xf32>
    %89 = tpu.matmul %87, %88, %cst_33 {dimension_numbers = #tpu.dot_dimension_numbers<[1], [0], [0], [1], [0, 0, 1, 1], [], []>} : vector<2x32xbf16>, vector<32x32xbf16>, vector<2x32xf32> -> vector<2x32xf32>
    %90 = vector.broadcast %7 : vector<1x32xf32> to vector<2x32xf32>
    %91 = arith.addf %89, %90 : vector<2x32xf32>
    %92 = arith.mulf %91, %91 : vector<2x32xf32>
    %cst_34 = arith.constant dense<0.000000e+00> : vector<2xf32>
    %93 = vector.multi_reduction <add>, %92, %cst_34 [1] : vector<2x32xf32> to vector<2xf32>
    %94 = vector.shape_cast %93 : vector<2xf32> to vector<2x1xf32>
    %cst_35 = arith.constant 9.99999996E-13 : f32
    %95 = vector.broadcast %cst_35 : f32 to vector<2x1xf32>
    %96 = arith.addf %94, %95 : vector<2x1xf32>
    %97 = math.rsqrt %96 : vector<2x1xf32>
    %98 = vector.broadcast %97 : vector<2x1xf32> to vector<2x32xf32>
    %99 = arith.mulf %91, %98 : vector<2x32xf32>
    %100 = arith.truncf %99 : vector<2x32xf32> to vector<2x32xbf16>
    %cst_36 = arith.constant dense<0.000000e+00> : vector<2x2xf32>
    %101 = tpu.matmul %100, %100, %cst_36 {dimension_numbers = #tpu.dot_dimension_numbers<[1], [1], [0], [0], [0, 0, 1, 0], [], []>} : vector<2x32xbf16>, vector<2x32xbf16>, vector<2x2xf32> -> vector<2x2xf32>
    %cst_37 = arith.constant 0.000000e+00 : f32
    %102 = vector.broadcast %cst_37 : f32 to vector<16x96xf32>
    %103 = tpu.concatenate %48, %102 in 1 : vector<16x32xf32>, vector<16x96xf32> -> vector<16x128xf32>
    %c0_38 = arith.constant 0 : index
    %c0_39 = arith.constant 0 : index
    %104 = vector.load %arg3[%c0_38, %c0_39] : memref<48x128xf32, #tpu.memory_space<vmem>>, vector<16x128xf32>
    tpu.vector_store %arg3[%c0_38, %c0_39], %103 {strides = array<i32>} : memref<48x128xf32, #tpu.memory_space<vmem>>, vector<16x128xf32>,
    %cst_40 = arith.constant 0.000000e+00 : f32
    %105 = vector.broadcast %cst_40 : f32 to vector<2x96xf32>
    %106 = tpu.concatenate %91, %105 in 1 : vector<2x32xf32>, vector<2x96xf32> -> vector<2x128xf32>
    %cst_41 = arith.constant 0.000000e+00 : f32
    %107 = vector.broadcast %cst_41 : f32 to vector<6x128xf32>
    %108 = tpu.concatenate %106, %107 in 0 : vector<2x128xf32>, vector<6x128xf32> -> vector<8x128xf32>
    %c16 = arith.constant 16 : index
    %c0_42 = arith.constant 0 : index
    %109 = vector.load %arg3[%c16, %c0_42] : memref<48x128xf32, #tpu.memory_space<vmem>>, vector<8x128xf32>
    tpu.vector_store %arg3[%c16, %c0_42], %108 {strides = array<i32>} : memref<48x128xf32, #tpu.memory_space<vmem>>, vector<8x128xf32>,
    %cst_43 = arith.constant 0.000000e+00 : f32
    %110 = vector.broadcast %cst_43 : f32 to vector<16x112xf32>
    %111 = tpu.concatenate %50, %110 in 1 : vector<16x16xf32>, vector<16x112xf32> -> vector<16x128xf32>
    %c24 = arith.constant 24 : index
    %c0_44 = arith.constant 0 : index
    %112 = vector.load %arg3[%c24, %c0_44] : memref<48x128xf32, #tpu.memory_space<vmem>>, vector<16x128xf32>
    tpu.vector_store %arg3[%c24, %c0_44], %111 {strides = array<i32>} : memref<48x128xf32, #tpu.memory_space<vmem>>, vector<16x128xf32>,
    %cst_45 = arith.constant 0.000000e+00 : f32
    %113 = vector.broadcast %cst_45 : f32 to vector<2x126xf32>
    %114 = tpu.concatenate %101, %113 in 1 : vector<2x2xf32>, vector<2x126xf32> -> vector<2x128xf32>
    %cst_46 = arith.constant 0.000000e+00 : f32
    %115 = vector.broadcast %cst_46 : f32 to vector<6x128xf32>
    %116 = tpu.concatenate %114, %115 in 0 : vector<2x128xf32>, vector<6x128xf32> -> vector<8x128xf32>
    %c40_47 = arith.constant 40 : index
    %c0_48 = arith.constant 0 : index
    %117 = vector.load %arg3[%c40_47, %c0_48] : memref<48x128xf32, #tpu.memory_space<vmem>>, vector<8x128xf32>
    tpu.vector_store %arg3[%c40_47, %c0_48], %116 {strides = array<i32>} : memref<48x128xf32, #tpu.memory_space<vmem>>, vector<8x128xf32>,
    return
  }
}

</mosaic_0001>

<bundles_post_ra>
// kernel: tpu_custom_call.1
= control target key start
LH: loop header
LB: loop body
LE: loop exit
PB: predicated region body
PF: predicated region fallthrough
CT: control target
= control target key end

     0   :  { %s496_s0 = inlined_call_operand.vmem [shape: f32[16,32], index: 0, kind: input, shape index: {}]   ;;  %s497_s1 = inlined_call_operand.vmem [shape: f32[2,32], index: 1, kind: input, shape index: {}]   ;;  %s498_s2 = inlined_call_operand.vmem [shape: f32[160,32], index: 2, kind: input, shape index: {}]   ;;  %s499_s3 = inlined_call_operand.hbm [shape: f32[48,128], index: 3, kind: output, shape index: {}]  }
   0x1   :  { %v18_v0 = vld [vmem:[%s498_s2 + $0x10] sm:$0xff]  ;;  %v19_v1 = vld [vmem:[%s498_s2 + $0x18] sm:$0xff]  ;;  %v28_v2 = vld [vmem:[%s498_s2 + $0x60] sm:$0xff] }
   0x2   :  { %v40_v3 = vpack.c.bf16 %v19_v1, %v18_v0  ;;  %v29_v4 = vld [vmem:[%s498_s2 + $0x68] sm:$0xff]  ;;  %v16_v5 = vld [vmem:[%s498_s2] sm:$0xff]  ;;  %v26_v8 = vld [vmem:[%s498_s2 + $0x50] sm:$0xff] }
   0x3   :  { %v17_v6 = vld [vmem:[%s498_s2 + $0x8] sm:$0xff]  ;;  %v171_v7 = vpack.c.bf16 %v29_v4, %v28_v2  ;;  %v27_v9 = vld [vmem:[%s498_s2 + $0x58] sm:$0xff]  ;;  %v36_v11 = vld [vmem:[%s496_s0] sm:$0xff] }
   0x4   :  { %52 = vmatpush.bf16.msra.mxu0 %v40_v3  ;;  %v39_v10 = vpack.c.bf16 %v17_v6, %v16_v5  ;;  %v37_v12 = vld [vmem:[%s496_s0 + $0x8] sm:$0xff]  ;;  %v170_v13 = vpack.c.bf16 %v27_v9, %v26_v8  ;;  %v168_v14 = vld [vmem:[%s497_s1] sm:$0x3] }
   0x5   :  { %182 = vmatpush.bf16.msra.mxu3 %v171_v7 }
   0x6   :  { %8 = vsyncpa [#allocation3], 0  ;;  %v38_v15 = vpack.c.bf16 %v37_v12, %v36_v11  ;;  %vm42_vm0 = vcmask 261120   ;;  %v169_v16 = vpack.c.bf16 %v168_v14, %v168_v14  ;;  %v319_v17 = vld [vmem:[%s498_s2 + $0x20] ss:$0 sm:$0xff]  ;;  %vm198_vm1 = vcmask 254976  }
   0x7   :  { %v320_v21 = vld [vmem:[%s498_s2 + $0x70] ss:$0 sm:$0xff]  ;;  %v365_v56 = vmov 32.0   ;;  %v33_v14 = vld [vmem:[%s498_s2 + $0x88] sm:$0xff]  ;;  %vm279_vm12 = vcmask 1041408   ;;  %s297_s5 = sshll.u32 %s499_s3, 4  ;;  %s298_s5 = int_to_ptr.hbm [resolvable:$true] %s297_s5 }
   0x8   :  { %53 = vmatpush.bf16.msra.mxu0 %v39_v10  ;;  %s367_s6 = smov 128   ;;  %s368_s7 = smov 8  }
   0x9   :  { %183 = vmatpush.bf16.msra.mxu3 %v170_v13 }
   0xb   :  { %309 = vmatmul.msk.bf16.vlgmr.msra.gmra.mxu0 %vm42_vm0, %v38_v15  ;;  %v34_v15 = vld [vmem:[%s498_s2 + $0x90] sm:$0xff] }
   0xc   :  { %312 = vmatmul.msk.bf16.vlgmr.msra.gmra.mxu3 %vm42_vm0, %v169_v16  ;;  %v223_v16 = vpack.c.bf16 %v34_v15, %v33_v14 }
   0xe   :  { %234 = vmatpush.bf16.msrb.mxu0 %v223_v16 }
  0x88   :  { %v55_v18 = vpop.f32.mrf.mxu0 }
  0x89   :  { %v56_v19 = vadd.f32 %v319_v17, %v55_v18  ;;  %v24_v18 = vld [vmem:[%s498_s2 + $0x40] sm:$0xff] }
  0x8b   :  { %v62_v20 = vmul.f32 0.044715, %v56_v19  ;;  %v60_v39 = vmul.f32 0.5, %v56_v19 }
  0x8d   :  { %v64_v22 = vmul.f32 %v62_v20, %v56_v19  ;;  %v31_v20 = vld [vmem:[%s498_s2 + $0x78] sm:$0xff] }
  0x8f   :  { %v185_v23 = vpop.f32.mrf.mxu3  ;;  %v66_v24 = vmul.f32 %v64_v22, %v56_v19 }
  0x90   :  { %v186_v25 = vadd.f32 %v320_v21, %v185_v23  ;;  %v57_v26 = vpop.f32.mrf.mxu0  ;;  %v32_v21 = vld [vmem:[%s498_s2 + $0x80] sm:$0xff]  ;;  %v21_v23 = vld [vmem:[%s498_s2 + $0x28] sm:$0xff] }
  0x91   :  { %v58_v27 = vadd.f32 %v319_v17, %v57_v26  ;;  %v68_v28 = vadd.f32 %v66_v24, %v56_v19  ;;  %v23_v17 = vld [vmem:[%s498_s2 + $0x38] sm:$0xff]  ;;  %v222_v22 = vpack.c.bf16 %v32_v21, %v31_v20  ;;  %v22_v24 = vld [vmem:[%s498_s2 + $0x30] sm:$0xff] }
  0x92   :  { %v190_v29 = vmul.f32 0.044715, %v186_v25  ;;  %v189_v49 = vmul.f32 0.5, %v186_v25  ;;  %v131_v19 = vpack.c.bf16 %v24_v18, %v23_v17 }
  0x93   :  { %v63_v30 = vmul.f32 0.044715, %v58_v27  ;;  %v70_v31 = vmul.f32 0.7978845, %v68_v28  ;;  %v61_v47 = vmul.f32 0.5, %v58_v27  ;;  %235 = vmatpush.bf16.msrb.mxu0 %v222_v22 }
  0x94   :  { %v191_v32 = vmul.f32 %v190_v29, %v186_v25  ;;  %142 = vmatpush.bf16.msra.mxu1 %v131_v19 }
  0x95   :  { %323 = vtanh.f32 %v70_v31  ;;  %v65_v33 = vmul.f32 %v63_v30, %v58_v27 }
  0x96   :  { %v192_v34 = vmul.f32 %v191_v32, %v186_v25 }
  0x97   :  { %v187_v35 = vpop.f32.mrf.mxu3  ;;  %v67_v36 = vmul.f32 %v65_v33, %v58_v27 }
  0x98   :  { %v193_v37 = vadd.f32 %v192_v34, %v186_v25  ;;  %v130_v25 = vpack.c.bf16 %v22_v24, %v21_v23 }
  0x99   :  { %v69_v38 = vadd.f32 %v67_v36, %v58_v27 }
  0x9a   :  { %v194_v40 = vmul.f32 0.7978845, %v193_v37  ;;  %143 = vmatpush.bf16.msra.mxu1 %v130_v25 }
  0x9b   :  { %v324_v41 = vpop.eup %323  ;;  %v71_v42 = vmul.f32 0.7978845, %v69_v38 }
  0x9c   :  { %v74_v43 = vadd.f32 1.0, %v324_v41  ;;  %325 = vtanh.f32 %v194_v40 }
  0x9d   :  { %327 = vtanh.f32 %v71_v42 }
  0x9e   :  { %v76_v44 = vmul.f32 %v74_v43, %v60_v39  ;;  %329 = vrcp.f32 %v365_v56 }
  0xa0   :  { %v78_v45 = vsel %vm42_vm0, %v76_v44, 0.0 }
  0xa1   :  { %79 = vadd.xlane.f32.xlu1 %v78_v45 }
  0xa2   :  { %v326_v46 = vpop.eup %325 }
  0xa3   :  { %v328_v48 = vpop.eup %327  ;;  %v196_v50 = vadd.f32 1.0, %v326_v46 }
  0xa4   :  { %v75_v51 = vadd.f32 1.0, %v328_v48  ;;  %v330_v57 = vpop.eup %329 }
  0xa5   :  { %v197_v52 = vmul.f32 %v196_v50, %v189_v49  ;;  %v85_v58 = vmul.f32 32.0, %v330_v57  ;;  %vm89_vm2 = vweird.f32 %v330_v57 }
  0xa6   :  { %v77_v53 = vmul.f32 %v75_v51, %v61_v47 }
  0xa7   :  { %v199_v54 = vsel %vm198_vm1, %v197_v52, 0.0  ;;  %v86_v59 = vsub.f32 1.0, %v85_v58 }
  0xa8   :  { %200 = vadd.xlane.f32.xlu0 %v199_v54  ;;  %v81_v55 = vsel %vm42_vm0, %v77_v53, 0.0 }
  0xa9   :  { %82 = vadd.xlane.f32.xlu1 %v81_v55  ;;  %v87_v60 = vmul.f32 %v330_v57, %v86_v59 }
  0xab   :  { %v88_v61 = vadd.f32 %v330_v57, %v87_v60 }
  0xad   :  { %v90_v62 = vsel %vm89_vm2, %v330_v57, %v88_v61  ;;  %v321_v61 = vld [vmem:[%s498_s2 + $0x98] ss:$0 sm:$0xff]  ;;  %vm287_vm2 = vcmask 15360  }
 0x114   :  { %v80_v63 = vpop.xlane.xlu1 %79 }
 0x115   :  { %v91_v0 = vmul.f32 %v90_v62, %v80_v63 }
 0x117   :  { %v433_v1 = vsub.f32 %v76_v44, %v91_v0 }
 0x119   :  { %v95_v2 = vmul.f32 %v433_v1, %v433_v1 }
 0x11b   :  { %v201_v3 = vpop.xlane.xlu0 %200  ;;  %v97_v4 = vsel %vm42_vm0, %v95_v2, 0.0 }
 0x11c   :  { %v202_v5 = vmul.f32 %v201_v3, %v90_v62  ;;  %98 = vadd.xlane.f32.xlu2 %v97_v4  ;;  %v83_v6 = vpop.xlane.xlu1 %82 }
 0x11d   :  { %v92_v7 = vmul.f32 %v90_v62, %v83_v6 }
 0x11e   :  { %v438_v8 = vsub.f32 %v197_v52, %v202_v5 }
 0x11f   :  { %v440_v9 = vsub.f32 %v77_v53, %v92_v7 }
 0x120   :  { %v204_v10 = vmul.f32 %v438_v8, %v438_v8 }
 0x121   :  { %v96_v11 = vmul.f32 %v440_v9, %v440_v9 }
 0x122   :  { %v205_v12 = vsel %vm198_vm1, %v204_v10, 0.0 }
 0x123   :  { %206 = vadd.xlane.f32.xlu0 %v205_v12  ;;  %v100_v13 = vsel %vm42_vm0, %v96_v11, 0.0 }
 0x124   :  { %101 = vadd.xlane.f32.xlu2 %v100_v13 }
 0x18f   :  { %v99_v26 = vpop.xlane.xlu2 %98 }
 0x190   :  { %v103_v27 = vmul.f32 %v99_v26, %v90_v62 }
 0x192   :  { %v105_v28 = vadd.f32 1e-05, %v103_v27 }
 0x194   :  { %331 = vrsqrt.f32 %v105_v28  ;;  %vm113_vm5 = vweird.f32 %v105_v28 }
 0x196   :  { %v207_v29 = vpop.xlane.xlu0 %206 }
 0x197   :  { %v208_v30 = vmul.f32 %v207_v29, %v90_v62  ;;  %v102_v31 = vpop.xlane.xlu2 %101 }
 0x198   :  { %v104_v32 = vmul.f32 %v102_v31, %v90_v62  ;;  %v322_v62 = vld [vmem:[%s498_s2 + $0x48] ss:$0 sm:$0xff]  ;;  %s366_s2 = smov [#allocation2]  }
 0x199   :  { %v209_v33 = vadd.f32 1e-05, %v208_v30  ;;  %s295_s29 = sshll.u32 %s366_s2, 4  ;;  %s296_s29 = int_to_ptr.vmem [resolvable:$true] %s295_s29 }
 0x19a   :  { %v332_v34 = vpop.eup %331  ;;  %v106_v35 = vadd.f32 1e-05, %v104_v32 }
 0x19b   :  { %v108_v36 = vmul.f32 %v332_v34, %v105_v28  ;;  %333 = vrsqrt.f32 %v209_v33  ;;  %vm114_vm3 = vweird.f32 %v332_v34  ;;  %vm216_vm8 = vweird.f32 %v209_v33 }
 0x19c   :  { %335 = vrsqrt.f32 %v106_v35  ;;  %vm115_vm7 = vmor %vm113_vm5, %vm114_vm3  ;;  %vm123_vm10 = vweird.f32 %v106_v35 }
 0x19d   :  { %v109_v37 = vmul.f32 %v332_v34, %v108_v36 }
 0x19f   :  { %v110_v38 = vmul.f32 0.5, %v109_v37 }
 0x1a1   :  { %v334_v39 = vpop.eup %333  ;;  %v111_v42 = vsub.f32 1.5, %v110_v38 }
 0x1a2   :  { %v336_v40 = vpop.eup %335  ;;  %v211_v41 = vmul.f32 %v334_v39, %v209_v33  ;;  %vm217_vm4 = vweird.f32 %v334_v39 }
 0x1a3   :  { %v118_v43 = vmul.f32 %v336_v40, %v106_v35  ;;  %v112_v47 = vmul.f32 %v332_v34, %v111_v42  ;;  %vm124_vm6 = vweird.f32 %v336_v40  ;;  %vm218_vm9 = vmor %vm216_vm8, %vm217_vm4 }
 0x1a4   :  { %v212_v44 = vmul.f32 %v334_v39, %v211_v41  ;;  %vm125_vm11 = vmor %vm123_vm10, %vm124_vm6 }
 0x1a5   :  { %v119_v45 = vmul.f32 %v336_v40, %v118_v43  ;;  %v116_v53 = vsel %vm115_vm7, %v332_v34, %v112_v47 }
 0x1a6   :  { %v213_v46 = vmul.f32 0.5, %v212_v44  ;;  %v127_v57 = vmul.f32 %v116_v53, %v433_v1 }
 0x1a7   :  { %v120_v48 = vmul.f32 0.5, %v119_v45 }
 0x1a8   :  { %v214_v49 = vsub.f32 1.5, %v213_v46 }
 0x1a9   :  { %v121_v50 = vsub.f32 1.5, %v120_v48 }
 0x1aa   :  { %v215_v51 = vmul.f32 %v334_v39, %v214_v49 }
 0x1ab   :  { %v122_v52 = vmul.f32 %v336_v40, %v121_v50 }
 0x1ac   :  { %v219_v54 = vsel %vm218_vm9, %v334_v39, %v215_v51 }
 0x1ad   :  { %v220_v55 = vmul.f32 %v219_v54, %v438_v8  ;;  %v126_v56 = vsel %vm125_vm11, %v336_v40, %v122_v52 }
 0x1ae   :  { %v128_v58 = vmul.f32 %v126_v56, %v440_v9 }
 0x1af   :  { %v221_v59 = vpack.c.bf16 %v220_v55, %v220_v55 }
 0x1b0   :  { %v129_v60 = vpack.c.bf16 %v128_v58, %v127_v57 }
 0x1b1   :  { %313 = vmatmul.msk.bf16.vlgmr.msrb.gmra.mxu0 %vm42_vm0, %v221_v59 }
 0x1b2   :  { %310 = vmatmul.msk.bf16.vlgmr.msra.gmra.mxu1 %vm42_vm0, %v129_v60 }
 0x22e   :  { %v237_v63 = vpop.f32.mrf.mxu0 }
 0x22f   :  { %v238_v0 = vadd.f32 %v321_v61, %v237_v63  ;;  %v145_v2 = vpop.f32.mrf.mxu1 }
 0x230   :  { %v146_v1 = vadd.f32 %v322_v62, %v145_v2 }
 0x231   :  { %v241_v3 = vmul.f32 %v238_v0, %v238_v0  ;;  %v278_v4 = vsel %vm42_vm0, %v238_v0, 0.0 }
 0x232   :  { %v274_v5 = vsel %vm42_vm0, %v146_v1, 0.0  ;;  %v280_v6 = vsel %vm279_vm12, %v278_v4, 0.0 }
 0x233   :  { %276 = vst [vmem:[#allocation2] sm:$0xff] %v274_v5  ;;  %v242_v7 = vsel %vm198_vm1, %v241_v3, 0.0  ;;  %vm282_vm1 = vcmask 130048  }
 0x234   :  { %243 = vadd.xlane.f32.xlu0 %v242_v7  ;;  %281 = vst [vmem:[#allocation2 + $0x10] sm:$0xff] %v280_v6 }
 0x236   :  { %v239_v8 = vpop.f32.mrf.mxu0 }
 0x237   :  { %v147_v9 = vpop.f32.mrf.mxu1 }
 0x238   :  { %v148_v10 = vadd.f32 %v322_v62, %v147_v9 }
 0x23a   :  { %v275_v11 = vsel %vm42_vm0, %v148_v10, 0.0  ;;  %v150_v12 = vpack.c.bf16 %v148_v10, %v146_v1 }
 0x23b   :  { %277 = vst [vmem:[#allocation2 + $0x8] sm:$0xff] %v275_v11 }
 0x23c   :  { %v152_v13 = vsel %vm42_vm0, %v150_v12, 0 }
 0x23d   :  { %161 = vmatpush.bf16.xpose.msra.mxu2 %v152_v13 }
 0x244   :  { %311 = vmatmul.msk.bf16.vlgmr.msra.gmra.mxu2 %vm42_vm0, %v150_v12 }
 0x2a7   :  { %v244_v14 = vpop.xlane.xlu0 %243 }
 0x2a8   :  { %v245_v15 = vadd.f32 1e-12, %v244_v14 }
 0x2aa   :  { %337 = vrsqrt.f32 %v245_v15  ;;  %vm252_vm14 = vweird.f32 %v245_v15 }
 0x2b0   :  { %v338_v16 = vpop.eup %337 }
 0x2b1   :  { %v247_v17 = vmul.f32 %v338_v16, %v245_v15  ;;  %vm253_vm13 = vweird.f32 %v338_v16 }
 0x2b2   :  { %vm254_vm15 = vmor %vm252_vm14, %vm253_vm13 }
 0x2b3   :  { %v248_v18 = vmul.f32 %v338_v16, %v247_v17 }
 0x2b5   :  { %v249_v19 = vmul.f32 0.5, %v248_v18 }
 0x2b7   :  { %v250_v20 = vsub.f32 1.5, %v249_v19 }
 0x2b9   :  { %v251_v21 = vmul.f32 %v338_v16, %v250_v20 }
 0x2bb   :  { %v255_v22 = vsel %vm254_vm15, %v338_v16, %v251_v21 }
 0x2bc   :  { %v256_v23 = vmul.f32 %v255_v22, %v238_v0 }
 0x2be   :  { %v257_v24 = vpack.c.bf16 %v256_v23, %v256_v23 }
 0x2c0   :  { %v259_v25 = vsel %vm42_vm0, %v257_v24, 0 }
 0x2c1   :  { %268 = vmatpush.bf16.xpose.msrb.mxu1 %v259_v25 }
 0x2c7   :  { %v163_v26 = vpop.f32.mrf.mxu2 }
 0x2c8   :  { %v283_v27 = vsel %vm282_vm1, %v163_v26, 0.0  ;;  %314 = vmatmul.msk.bf16.vlgmr.msrb.gmra.mxu1 %vm42_vm0, %v257_v24 }
 0x2c9   :  { %285 = vst [vmem:[#allocation2 + $0x18] sm:$0xff] %v283_v27 }
 0x2cf   :  { %v165_v28 = vpop.f32.mrf.mxu2 }
 0x2d0   :  { %v284_v29 = vsel %vm282_vm1, %v165_v28, 0.0 }
 0x2d1   :  { %286 = vst [vmem:[#allocation2 + $0x20] sm:$0xff] %v284_v29 }
 0x345   :  { %v270_v30 = vpop.f32.mrf.mxu1 }
 0x346   :  { %v288_v31 = vsel %vm287_vm2, %v270_v30, 0.0 }
 0x347   :  { %v289_v32 = vsel %vm279_vm12, %v288_v31, 0.0 }
 0x348   :  { %290 = vst [vmem:[#allocation2 + $0x28] sm:$0xff] %v289_v32 }
 0x349   :  { %303 = dma.vmem_to_hbm [thread:$0]  %s296_s29, 768, %s298_s5, [#allocation3], %s367_s6, %s367_s6, %s368_s7  }
 0x34d   :  { %v272_v33 = vpop.f32.mrf.mxu1 }
 0x34e   :  { %363 = dma.done.wait [#allocation3], 768  }
 0x34f   :  { %364 = vsyncadd [#allocation3], 4294966528 }
 0x350   :  { %308 = vsyncpa [#allocation3], 1 }

</bundles_post_ra>
